<compile_context>
chip_gen: v6e
topology: v6e:2x2x1
jax: 0.10.0
libtpu: 0.0.40
codegen_flags: <defaults>
</compile_context>

<pallas_src>
import math
import functools

import jax
import jax.numpy as jnp
from jax import lax
from jax.experimental import pallas as pl
from jax.experimental.pallas import tpu as pltpu


def _mhsa_kernel(x_ref, wqkv_ref, wo_ref, bo_ref, o_ref, acc_ref,
                 *, head_dim, heads_per_group):
    grp = pl.program_id(1)
    G, hd = heads_per_group, head_dim
    gw = G * hd

    @pl.when(grp == 0)
    def _init():
        acc_ref[...] = jnp.zeros_like(acc_ref)

    x = x_ref[0]                       # (S, E), compute dtype (f32 or bf16)
    cdtype = x.dtype

    # One wide MXU pass: (S, E) @ (E, 3*G*hd).  The 1/sqrt(hd) scale was
    # pre-folded into the q columns, so no score scaling below.
    qkv = jnp.dot(x, wqkv_ref[0], preferred_element_type=jnp.float32)

    # Lane-aligned group slabs at offsets 0, G*hd, 2*G*hd.
    q_g = qkv[:, :gw].astype(cdtype)            # (S, G*hd)
    k_g = qkv[:, gw:2 * gw].astype(cdtype)      # (S, G*hd)
    v_g = qkv[:, 2 * gw:].astype(cdtype)        # (S, G*hd)

    ctx_heads = []
    for g in range(G):                 # static unroll over heads in the group
        lo, hi = g * hd, (g + 1) * hd
        q = q_g[:, lo:hi]
        k = k_g[:, lo:hi]
        v = v_g[:, lo:hi]

        # scores = q @ k^T, contracting the last dims (no transpose of k).
        s = lax.dot_general(q, k, (((1,), (1,)), ((), ())),
                            preferred_element_type=jnp.float32)   # (S, S) f32

        # Numerically stable softmax; normalization deferred to the context.
        s = s - jnp.max(s, axis=-1, keepdims=True)
        p = jnp.exp(s)                                            # in [0, 1]
        denom = jnp.sum(p, axis=-1, keepdims=True)                # (S, 1) f32

        ctx = jnp.dot(p.astype(cdtype), v,
                      preferred_element_type=jnp.float32)         # (S, hd)
        ctx = ctx * pl.reciprocal(denom, approx=True)             # deferred norm
        ctx_heads.append(ctx.astype(cdtype))

    # Combine the G per-head contexts (register-level lane merge; G is small).
    ctx_g = ctx_heads[0] if G == 1 else jnp.concatenate(ctx_heads, axis=-1)

    # Fold the output projection into the per-group accumulation (K = G*hd).
    acc_ref[...] += jnp.dot(ctx_g, wo_ref[0],
                            preferred_element_type=jnp.float32)   # (S, E)

    @pl.when(grp == pl.num_programs(1) - 1)
    def _finalize():
        out = acc_ref[...] + bo_ref[...].astype(jnp.float32)      # bias once
        o_ref[0] = out.astype(o_ref.dtype)


def multi_head_self_attention(x, wq, wk, wv, wo, bo, *, num_heads,
                              compute_dtype=None):
    """x: (B, S, E); wq/wk/wv/wo: (E, E); bo: (E,). Returns (B, S, E).

    compute_dtype: dtype used for MXU operands (e.g. jnp.bfloat16 for 2-4x
    MXU throughput); accumulation and softmax stay f32. Defaults to x.dtype.
    """
    B, S, E = x.shape
    assert E % num_heads == 0
    hd = E // num_heads

    # Heads per grid step: aim for G*hd to be a (multiple of) 128 lanes.
    G = min(num_heads, max(1, 128 // hd))
    while num_heads % G:
        G -= 1
    n_groups = num_heads // G

    cdtype = jnp.dtype(compute_dtype) if compute_dtype is not None else x.dtype
    scale = 1.0 / math.sqrt(hd)

    # One-time weight re-layout (would happen at weight-load time in a model):
    #   group i of wqkv_groups = [Wq_{i*G..} * scale | Wk_{...} | Wv_{...}]
    #   (E, 3*G*hd); wo_groups[i] = Wo[i*G*hd:(i+1)*G*hd, :]  (G*hd, E).
    def regroup(w):   # (E, E) head-major columns -> (n_groups, E, G*hd)
        return w.reshape(E, n_groups, G * hd).transpose(1, 0, 2)

    wqkv_groups = jnp.concatenate(
        [regroup(wq * scale), regroup(wk), regroup(wv)],
        axis=-1).astype(cdtype)                          # (n_groups, E, 3*G*hd)
    wo_groups = wo.reshape(n_groups, G * hd, E).astype(cdtype)
    bo2 = bo.reshape(1, E).astype(jnp.float32)

    kernel = functools.partial(_mhsa_kernel, head_dim=hd, heads_per_group=G)

    return pl.pallas_call(
        kernel,
        out_shape=jax.ShapeDtypeStruct((B, S, E), x.dtype),
        grid_spec=pltpu.PrefetchScalarGridSpec(
            num_scalar_prefetch=0,
            grid=(B, n_groups),
            in_specs=[
                # x: constant across the head-group axis -> fetched once per b.
                pl.BlockSpec((1, S, E), lambda b, h: (b, 0, 0)),
                # fused per-group QKV weights, streamed one group at a time.
                pl.BlockSpec((1, E, 3 * G * hd), lambda b, h: (h, 0, 0)),
                # per-group rows of the output projection.
                pl.BlockSpec((1, G * hd, E), lambda b, h: (h, 0, 0)),
                # output-projection bias.
                pl.BlockSpec((1, E), lambda b, h: (0, 0)),
            ],
            out_specs=pl.BlockSpec((1, S, E), lambda b, h: (b, 0, 0)),
            scratch_shapes=[pltpu.VMEM((S, E), jnp.float32)],
        ),
        compiler_params=pltpu.CompilerParams(
            dimension_semantics=("parallel", "arbitrary")),
    )(x.astype(cdtype), wqkv_groups, wo_groups, bo2)


def _reference(x, wq, wk, wv, wo, bo, *, num_heads):
    """Pure-JAX reference mirroring the PyTorch forward (mask=None, eval)."""
    B, S, E = x.shape
    hd = E // num_heads
    q = (x @ wq).reshape(B, S, num_heads, hd).transpose(0, 2, 1, 3)
    k = (x @ wk).reshape(B, S, num_heads, hd).transpose(0, 2, 1, 3)
    v = (x @ wv).reshape(B, S, num_heads, hd).transpose(0, 2, 1, 3)
    scores = jnp.einsum("bhqd,bhkd->bhqk", q, k) / math.sqrt(hd)
    probs = jax.nn.softmax(scores, axis=-1)
    ctx = jnp.einsum("bhqk,bhkd->bhqd", probs, v)
    ctx = ctx.transpose(0, 2, 1, 3).reshape(B, S, E)
    return ctx @ wo + bo


if __name__ == "__main__":
    B, S, E, H = 2, 8, 32, 4   # batch, seq, embedding_dim, num_heads

    key = jax.random.PRNGKey(0)
    kx, kq, kk, kv, ko, kb = jax.random.split(key, 6)

    x = jax.random.normal(kx, (B, S, E), dtype=jnp.float32)
    # nn.Linear-style init scale (uniform(-1/sqrt(E), 1/sqrt(E)))
    lim = 1.0 / math.sqrt(E)
    wq = jax.random.uniform(kq, (E, E), jnp.float32, -lim, lim)
    wk = jax.random.uniform(kk, (E, E), jnp.float32, -lim, lim)
    wv = jax.random.uniform(kv, (E, E), jnp.float32, -lim, lim)
    wo = jax.random.uniform(ko, (E, E), jnp.float32, -lim, lim)
    bo = jax.random.uniform(kb, (E,), jnp.float32, -lim, lim)

    ref = _reference(x, wq, wk, wv, wo, bo, num_heads=H)

    # f32 compute path (tight tolerance; slack only for the EUP approx recip).
    out = multi_head_self_attention(x, wq, wk, wv, wo, bo, num_heads=H)
    out = jax.block_until_ready(out)
    assert out.shape == (B, S, E)
    assert jnp.allclose(out, ref, atol=5e-3, rtol=5e-3), "f32 mismatch vs reference"

    # bf16 MXU-operand path (looser tolerance for bf16 rounding).
    out_bf16 = multi_head_self_attention(x, wq, wk, wv, wo, bo, num_heads=H,
                                         compute_dtype=jnp.bfloat16)
    out_bf16 = jax.block_until_ready(out_bf16)
    assert out_bf16.shape == (B, S, E)
    assert jnp.allclose(out_bf16, ref, atol=5e-2, rtol=5e-2), "bf16 mismatch vs reference"

    print("KERNEL_OK")
</pallas_src>

<mosaic_0001>
module attributes {stable_mosaic.version = 11 : i64} {
  func.func @_mhsa_kernel(%arg0: i32, %arg1: i32, %arg2: memref<1x8x32xf32, #tpu.memory_space<vmem>>, %arg3: memref<1x32x96xf32, #tpu.memory_space<vmem>>, %arg4: memref<1x32x32xf32, #tpu.memory_space<vmem>>, %arg5: memref<1x32xf32, #tpu.memory_space<vmem>>, %arg6: memref<1x8x32xf32, #tpu.memory_space<vmem>>, %arg7: memref<8x32xf32, #tpu.memory_space<vmem>>) attributes {dimension_semantics = [#tpu.dimension_semantics<parallel>, #tpu.dimension_semantics<arbitrary>], iteration_bounds = array<i64: 2, 1>, scalar_prefetch = 0 : i64, scratch_operands = 1 : i64, tpu.core_type = #tpu.core_type<tc>, window_params = [{transform_indices = @transform_0, window_bounds = array<i64: 1, 8, 32>}, {transform_indices = @transform_1, window_bounds = array<i64: 1, 32, 96>}, {transform_indices = @transform_2, window_bounds = array<i64: 1, 32, 32>}, {pipeline_mode = #tpu.pipeline_mode<synchronous>, transform_indices = @transform_3, window_bounds = array<i64: 1, 32>}, {transform_indices = @transform_4, window_bounds = array<i64: 1, 8, 32>}]} {
    %c0_i32 = arith.constant 0 : i32
    %0 = arith.cmpi eq, %arg1, %c0_i32 : i32
    %1 = arith.extui %0 : i1 to i32
    %c0_i32_0 = arith.constant 0 : i32
    %2 = arith.cmpi ne, %1, %c0_i32_0 : i32
    scf.if %2 {
      %cst_32 = arith.constant 0.000000e+00 : f32
      %81 = vector.broadcast %cst_32 : f32 to vector<8x32xf32>
      %c0_33 = arith.constant 0 : index
      %c0_34 = arith.constant 0 : index
      %82 = vector.load %arg7[%c0_33, %c0_34] : memref<8x32xf32, #tpu.memory_space<vmem>>, vector<8x32xf32>
      tpu.vector_store %arg7[%c0_33, %c0_34], %81 {strides = array<i32>} : memref<8x32xf32, #tpu.memory_space<vmem>>, vector<8x32xf32>,
    } else {
    }
    %c0 = arith.constant 0 : index
    %c0_1 = arith.constant 0 : index
    %c0_2 = arith.constant 0 : index
    %3 = vector.load %arg2[%c0, %c0_1, %c0_2] : memref<1x8x32xf32, #tpu.memory_space<vmem>>, vector<1x8x32xf32>
    %4 = vector.shape_cast %3 : vector<1x8x32xf32> to vector<8x32xf32>
    %c0_3 = arith.constant 0 : index
    %c0_4 = arith.constant 0 : index
    %c0_5 = arith.constant 0 : index
    %5 = vector.load %arg3[%c0_3, %c0_4, %c0_5] : memref<1x32x96xf32, #tpu.memory_space<vmem>>, vector<1x32x96xf32>
    %6 = vector.shape_cast %5 : vector<1x32x96xf32> to vector<32x96xf32>
    %cst = arith.constant dense<0.000000e+00> : vector<8x96xf32>
    %7 = tpu.matmul %4, %6, %cst {dimension_numbers = #tpu.dot_dimension_numbers<[1], [0], [0], [1], [0, 0, 1, 1], [], []>} : vector<8x32xf32>, vector<32x96xf32>, vector<8x96xf32> -> vector<8x96xf32>
    %8 = vector.extract_strided_slice %7 {offsets = [0, 0], sizes = [8, 32], strides = [1, 1]} : vector<8x96xf32> to vector<8x32xf32>
    %9 = vector.extract_strided_slice %7 {offsets = [0, 32], sizes = [8, 32], strides = [1, 1]} : vector<8x96xf32> to vector<8x32xf32>
    %10 = vector.extract_strided_slice %7 {offsets = [0, 64], sizes = [8, 32], strides = [1, 1]} : vector<8x96xf32> to vector<8x32xf32>
    %11 = vector.extract_strided_slice %8 {offsets = [0, 0], sizes = [8, 8], strides = [1, 1]} : vector<8x32xf32> to vector<8x8xf32>
    %12 = vector.extract_strided_slice %9 {offsets = [0, 0], sizes = [8, 8], strides = [1, 1]} : vector<8x32xf32> to vector<8x8xf32>
    %13 = vector.extract_strided_slice %10 {offsets = [0, 0], sizes = [8, 8], strides = [1, 1]} : vector<8x32xf32> to vector<8x8xf32>
    %cst_6 = arith.constant dense<0.000000e+00> : vector<8x8xf32>
    %14 = tpu.matmul %11, %12, %cst_6 {dimension_numbers = #tpu.dot_dimension_numbers<[1], [1], [0], [0], [0, 0, 1, 0], [], []>} : vector<8x8xf32>, vector<8x8xf32>, vector<8x8xf32> -> vector<8x8xf32>
    %cst_7 = arith.constant dense<0xFF800000> : vector<8xf32>
    %15 = vector.multi_reduction <maximumf>, %14, %cst_7 [1] : vector<8x8xf32> to vector<8xf32>
    %16 = vector.shape_cast %15 : vector<8xf32> to vector<8x1xf32>
    %17 = vector.broadcast %16 : vector<8x1xf32> to vector<8x8xf32>
    %18 = arith.subf %14, %17 : vector<8x8xf32>
    %19 = math.exp %18 : vector<8x8xf32>
    %cst_8 = arith.constant dense<0.000000e+00> : vector<8xf32>
    %20 = vector.multi_reduction <add>, %19, %cst_8 [1] : vector<8x8xf32> to vector<8xf32>
    %21 = vector.shape_cast %20 : vector<8xf32> to vector<8x1xf32>
    %cst_9 = arith.constant dense<0.000000e+00> : vector<8x8xf32>
    %22 = tpu.matmul %19, %13, %cst_9 {dimension_numbers = #tpu.dot_dimension_numbers<[1], [0], [0], [1], [0, 0, 1, 1], [], []>} : vector<8x8xf32>, vector<8x8xf32>, vector<8x8xf32> -> vector<8x8xf32>
    %23 = tpu.reciprocal %21 {approx = true} : vector<8x1xf32> -> vector<8x1xf32>
    %24 = vector.broadcast %23 : vector<8x1xf32> to vector<8x8xf32>
    %25 = arith.mulf %22, %24 : vector<8x8xf32>
    %26 = vector.extract_strided_slice %8 {offsets = [0, 8], sizes = [8, 8], strides = [1, 1]} : vector<8x32xf32> to vector<8x8xf32>
    %27 = vector.extract_strided_slice %9 {offsets = [0, 8], sizes = [8, 8], strides = [1, 1]} : vector<8x32xf32> to vector<8x8xf32>
    %28 = vector.extract_strided_slice %10 {offsets = [0, 8], sizes = [8, 8], strides = [1, 1]} : vector<8x32xf32> to vector<8x8xf32>
    %cst_10 = arith.constant dense<0.000000e+00> : vector<8x8xf32>
    %29 = tpu.matmul %26, %27, %cst_10 {dimension_numbers = #tpu.dot_dimension_numbers<[1], [1], [0], [0], [0, 0, 1, 0], [], []>} : vector<8x8xf32>, vector<8x8xf32>, vector<8x8xf32> -> vector<8x8xf32>
    %cst_11 = arith.constant dense<0xFF800000> : vector<8xf32>
    %30 = vector.multi_reduction <maximumf>, %29, %cst_11 [1] : vector<8x8xf32> to vector<8xf32>
    %31 = vector.shape_cast %30 : vector<8xf32> to vector<8x1xf32>
    %32 = vector.broadcast %31 : vector<8x1xf32> to vector<8x8xf32>
    %33 = arith.subf %29, %32 : vector<8x8xf32>
    %34 = math.exp %33 : vector<8x8xf32>
    %cst_12 = arith.constant dense<0.000000e+00> : vector<8xf32>
    %35 = vector.multi_reduction <add>, %34, %cst_12 [1] : vector<8x8xf32> to vector<8xf32>
    %36 = vector.shape_cast %35 : vector<8xf32> to vector<8x1xf32>
    %cst_13 = arith.constant dense<0.000000e+00> : vector<8x8xf32>
    %37 = tpu.matmul %34, %28, %cst_13 {dimension_numbers = #tpu.dot_dimension_numbers<[1], [0], [0], [1], [0, 0, 1, 1], [], []>} : vector<8x8xf32>, vector<8x8xf32>, vector<8x8xf32> -> vector<8x8xf32>
    %38 = tpu.reciprocal %36 {approx = true} : vector<8x1xf32> -> vector<8x1xf32>
    %39 = vector.broadcast %38 : vector<8x1xf32> to vector<8x8xf32>
    %40 = arith.mulf %37, %39 : vector<8x8xf32>
    %41 = vector.extract_strided_slice %8 {offsets = [0, 16], sizes = [8, 8], strides = [1, 1]} : vector<8x32xf32> to vector<8x8xf32>
    %42 = vector.extract_strided_slice %9 {offsets = [0, 16], sizes = [8, 8], strides = [1, 1]} : vector<8x32xf32> to vector<8x8xf32>
    %43 = vector.extract_strided_slice %10 {offsets = [0, 16], sizes = [8, 8], strides = [1, 1]} : vector<8x32xf32> to vector<8x8xf32>
    %cst_14 = arith.constant dense<0.000000e+00> : vector<8x8xf32>
    %44 = tpu.matmul %41, %42, %cst_14 {dimension_numbers = #tpu.dot_dimension_numbers<[1], [1], [0], [0], [0, 0, 1, 0], [], []>} : vector<8x8xf32>, vector<8x8xf32>, vector<8x8xf32> -> vector<8x8xf32>
    %cst_15 = arith.constant dense<0xFF800000> : vector<8xf32>
    %45 = vector.multi_reduction <maximumf>, %44, %cst_15 [1] : vector<8x8xf32> to vector<8xf32>
    %46 = vector.shape_cast %45 : vector<8xf32> to vector<8x1xf32>
    %47 = vector.broadcast %46 : vector<8x1xf32> to vector<8x8xf32>
    %48 = arith.subf %44, %47 : vector<8x8xf32>
    %49 = math.exp %48 : vector<8x8xf32>
    %cst_16 = arith.constant dense<0.000000e+00> : vector<8xf32>
    %50 = vector.multi_reduction <add>, %49, %cst_16 [1] : vector<8x8xf32> to vector<8xf32>
    %51 = vector.shape_cast %50 : vector<8xf32> to vector<8x1xf32>
    %cst_17 = arith.constant dense<0.000000e+00> : vector<8x8xf32>
    %52 = tpu.matmul %49, %43, %cst_17 {dimension_numbers = #tpu.dot_dimension_numbers<[1], [0], [0], [1], [0, 0, 1, 1], [], []>} : vector<8x8xf32>, vector<8x8xf32>, vector<8x8xf32> -> vector<8x8xf32>
    %53 = tpu.reciprocal %51 {approx = true} : vector<8x1xf32> -> vector<8x1xf32>
    %54 = vector.broadcast %53 : vector<8x1xf32> to vector<8x8xf32>
    %55 = arith.mulf %52, %54 : vector<8x8xf32>
    %56 = vector.extract_strided_slice %8 {offsets = [0, 24], sizes = [8, 8], strides = [1, 1]} : vector<8x32xf32> to vector<8x8xf32>
    %57 = vector.extract_strided_slice %9 {offsets = [0, 24], sizes = [8, 8], strides = [1, 1]} : vector<8x32xf32> to vector<8x8xf32>
    %58 = vector.extract_strided_slice %10 {offsets = [0, 24], sizes = [8, 8], strides = [1, 1]} : vector<8x32xf32> to vector<8x8xf32>
    %cst_18 = arith.constant dense<0.000000e+00> : vector<8x8xf32>
    %59 = tpu.matmul %56, %57, %cst_18 {dimension_numbers = #tpu.dot_dimension_numbers<[1], [1], [0], [0], [0, 0, 1, 0], [], []>} : vector<8x8xf32>, vector<8x8xf32>, vector<8x8xf32> -> vector<8x8xf32>
    %cst_19 = arith.constant dense<0xFF800000> : vector<8xf32>
    %60 = vector.multi_reduction <maximumf>, %59, %cst_19 [1] : vector<8x8xf32> to vector<8xf32>
    %61 = vector.shape_cast %60 : vector<8xf32> to vector<8x1xf32>
    %62 = vector.broadcast %61 : vector<8x1xf32> to vector<8x8xf32>
    %63 = arith.subf %59, %62 : vector<8x8xf32>
    %64 = math.exp %63 : vector<8x8xf32>
    %cst_20 = arith.constant dense<0.000000e+00> : vector<8xf32>
    %65 = vector.multi_reduction <add>, %64, %cst_20 [1] : vector<8x8xf32> to vector<8xf32>
    %66 = vector.shape_cast %65 : vector<8xf32> to vector<8x1xf32>
    %cst_21 = arith.constant dense<0.000000e+00> : vector<8x8xf32>
    %67 = tpu.matmul %64, %58, %cst_21 {dimension_numbers = #tpu.dot_dimension_numbers<[1], [0], [0], [1], [0, 0, 1, 1], [], []>} : vector<8x8xf32>, vector<8x8xf32>, vector<8x8xf32> -> vector<8x8xf32>
    %68 = tpu.reciprocal %66 {approx = true} : vector<8x1xf32> -> vector<8x1xf32>
    %69 = vector.broadcast %68 : vector<8x1xf32> to vector<8x8xf32>
    %70 = arith.mulf %67, %69 : vector<8x8xf32>
    %71 = tpu.concatenate %25, %40, %55, %70 in 1 : vector<8x8xf32>, vector<8x8xf32>, vector<8x8xf32>, vector<8x8xf32> -> vector<8x32xf32>
    %c0_22 = arith.constant 0 : index
    %c0_23 = arith.constant 0 : index
    %72 = vector.load %arg7[%c0_22, %c0_23] : memref<8x32xf32, #tpu.memory_space<vmem>>, vector<8x32xf32>
    %c0_24 = arith.constant 0 : index
    %c0_25 = arith.constant 0 : index
    %c0_26 = arith.constant 0 : index
    %73 = vector.load %arg4[%c0_24, %c0_25, %c0_26] : memref<1x32x32xf32, #tpu.memory_space<vmem>>, vector<1x32x32xf32>
    %74 = vector.shape_cast %73 : vector<1x32x32xf32> to vector<32x32xf32>
    %cst_27 = arith.constant dense<0.000000e+00> : vector<8x32xf32>
    %75 = tpu.matmul %71, %74, %cst_27 {dimension_numbers = #tpu.dot_dimension_numbers<[1], [0], [0], [1], [0, 0, 1, 1], [], []>} : vector<8x32xf32>, vector<32x32xf32>, vector<8x32xf32> -> vector<8x32xf32>
    %76 = arith.addf %72, %75 : vector<8x32xf32>
    %c0_28 = arith.constant 0 : index
    %c0_29 = arith.constant 0 : index
    %77 = vector.load %arg7[%c0_28, %c0_29] : memref<8x32xf32, #tpu.memory_space<vmem>>, vector<8x32xf32>
    tpu.vector_store %arg7[%c0_28, %c0_29], %76 {strides = array<i32>} : memref<8x32xf32, #tpu.memory_space<vmem>>, vector<8x32xf32>,
    %c0_i32_30 = arith.constant 0 : i32
    %78 = arith.cmpi eq, %arg1, %c0_i32_30 : i32
    %79 = arith.extui %78 : i1 to i32
    %c0_i32_31 = arith.constant 0 : i32
    %80 = arith.cmpi ne, %79, %c0_i32_31 : i32
    scf.if %80 {
      %c0_32 = arith.constant 0 : index
      %c0_33 = arith.constant 0 : index
      %81 = vector.load %arg7[%c0_32, %c0_33] : memref<8x32xf32, #tpu.memory_space<vmem>>, vector<8x32xf32>
      %c0_34 = arith.constant 0 : index
      %c0_35 = arith.constant 0 : index
      %82 = vector.load %arg5[%c0_34, %c0_35] : memref<1x32xf32, #tpu.memory_space<vmem>>, vector<1x32xf32>
      %83 = vector.broadcast %82 : vector<1x32xf32> to vector<8x32xf32>
      %84 = arith.addf %81, %83 : vector<8x32xf32>
      %c0_36 = arith.constant 0 : index
      %c0_37 = arith.constant 0 : index
      %c0_38 = arith.constant 0 : index
      %85 = vector.load %arg6[%c0_36, %c0_37, %c0_38] : memref<1x8x32xf32, #tpu.memory_space<vmem>>, vector<1x8x32xf32>
      %86 = vector.shape_cast %85 : vector<1x8x32xf32> to vector<8x32xf32>
      %87 = vector.shape_cast %84 : vector<8x32xf32> to vector<1x8x32xf32>
      tpu.vector_store %arg6[%c0_36, %c0_37, %c0_38], %87 {strides = array<i32>} : memref<1x8x32xf32, #tpu.memory_space<vmem>>, vector<1x8x32xf32>,
    } else {
    }
    return
  }
  func.func @transform_0(%arg0: i32, %arg1: i32) -> (i32, i32, i32) {
    %c0_i32 = arith.constant 0 : i32
    %c0_i32_0 = arith.constant 0 : i32
    %c0_i32_1 = arith.constant 0 : i32
    return %arg0, %c0_i32, %c0_i32_0 : i32, i32, i32
  }
  func.func @transform_1(%arg0: i32, %arg1: i32) -> (i32, i32, i32) {
    %c0_i32 = arith.constant 0 : i32
    %c0_i32_0 = arith.constant 0 : i32
    %c0_i32_1 = arith.constant 0 : i32
    return %arg1, %c0_i32, %c0_i32_0 : i32, i32, i32
  }
  func.func @transform_2(%arg0: i32, %arg1: i32) -> (i32, i32, i32) {
    %c0_i32 = arith.constant 0 : i32
    %c0_i32_0 = arith.constant 0 : i32
    %c0_i32_1 = arith.constant 0 : i32
    return %arg1, %c0_i32, %c0_i32_0 : i32, i32, i32
  }
  func.func @transform_3(%arg0: i32, %arg1: i32) -> (i32, i32) {
    %c0_i32 = arith.constant 0 : i32
    %c0_i32_0 = arith.constant 0 : i32
    %c0_i32_1 = arith.constant 0 : i32
    return %c0_i32, %c0_i32_0 : i32, i32
  }
  func.func @transform_4(%arg0: i32, %arg1: i32) -> (i32, i32, i32) {
    %c0_i32 = arith.constant 0 : i32
    %c0_i32_0 = arith.constant 0 : i32
    %c0_i32_1 = arith.constant 0 : i32
    return %arg0, %c0_i32, %c0_i32_0 : i32, i32, i32
  }
}

</mosaic_0001>

<bundles_post_ra>
// kernel: tpu_custom_call.1
= control target key start
LH: loop header
LB: loop body
LE: loop exit
PB: predicated region body
PF: predicated region fallthrough
CT: control target
= control target key end

     0   :  { %9 = vsyncpa [#allocation4], 0  ;;  %s1951_s0 = inlined_call_operand.hbm [shape: f32[2,8,32], index: 0, kind: input, shape index: {}]   ;;  %s1952_s1 = inlined_call_operand.hbm [shape: f32[1,32,96], index: 1, kind: input, shape index: {}]   ;;  %s1953_s2 = inlined_call_operand.hbm [shape: f32[1,32,32], index: 2, kind: input, shape index: {}]   ;;  %s1954_s3 = inlined_call_operand.vmem [shape: f32[1,32], index: 3, kind: input, shape index: {}]   ;;  %s1955_s4 = inlined_call_operand.hbm [shape: f32[2,8,32], index: 4, kind: output, shape index: {}]  }
   0x1   :  { %11 = vsyncpa [#allocation4 + $0x1], 0 }
   0x2   :  { %12 = vsyncpa [#allocation7], 0 }
   0x3   :  { %13 = vsyncpa [#allocation5], 0 }
   0x4   :  { %15 = vsyncpa [#allocation5 + $0x1], 0  ;;  %s1690_s15 = smov 0   ;;  %s1692_s16 = smov 0  }
   0x5   :  { %s1694_s17 = smov 0   ;;  %s1696_s18 = smov 0  }
   0x6   :  { %s1698_s19 = smov 0   ;;  %s1700_s20 = smov 0  }
   0x7 LB: > { %s1240_s21 = sadd.s32 4294967295, %s1641_s20   ;;  %s1241_s22 = sadd.s32 4294967294, %s1641_s20   ;;  %s1641_s20 = sphi %s1700_s20, %s21_s20   ;;  %s1637_s19 = sphi %s1698_s19, %s1975_s19   ;;  %s1633_s18 = sphi %s1696_s18, %s1974_s18   ;;  %s1629_s17 = sphi %s1694_s17, %s1973_s17   ;;  %s1625_s16 = sphi %s1692_s16, %s1972_s16   ;;  %s1621_s15 = sphi %s1690_s15, %s1971_s15  }
   0x8   : > { %p53_p0 = scmp.ne.s32.totalorder %s1625_s16, %s1621_s15  ;;  %p1724_p1 = scmp.eq.s32.totalorder %s1240_s21, 0 }
   0x9   : > { %p1728_p2 = scmp.eq.s32.totalorder %s1240_s21, 1  ;;  %p156_p3 = scmp.eq.s32.totalorder %s1241_s22, 1 }
   0xa   : > { %s1959_s23 = scalar_select %p1724_p1, 1, 0 }
   0xb   : > { %p1734_p4 = por %p1724_p1, %p53_p0  ;;  %p1242_p5 = scmp.ge.s32.totalorder %s1641_s20, 1 }
   0xc   : > { %p1739_p6 = por %p156_p3, %p53_p0  ;;  %p163_p7 = scmp.lt.s32.totalorder %s1641_s20, 3 }
   0xd   : > { %s1961_s25 = scalar_select %p1734_p4, 1, 0 }
   0xe   : > { %s1962_s26 = scalar_select %p1739_p6, 1, 0 }
   0xf   : > { %p1744_p8 = pnand %p1242_p5, %p163_p7  ;;  %s1643_s28 = smov [#allocation6]  }
  0x10   : > { %s178_s29 = sshll.u32 %s1643_s28, 4  ;;  %s1644_s5 = smov [#allocation8]   ;;  %s179_s29 = int_to_ptr.vmem [resolvable:$true] %s178_s29 }
  0x11   : > { %p1372_p9 = pneg %p1744_p8  ;;  %s194_s6 = sshll.u32 %s1644_s5, 4  ;;  %s195_s6 = int_to_ptr.vmem [resolvable:$true] %s194_s6 }
  0x12   : > { %s1488_s7 = scalar_lea.vmem %s179_s29, 512  ;;  %p1496_p5 = scmp.lt.s32.totalorder %s179_s29, %s179_s29 }
  0x13   : > { %p1753_p11 = pnand %p1372_p9, %p1724_p1  ;;  %p1489_p13 = scmp.ne.s32.totalorder %s179_s29, %s1488_s7 }
  0x14   : > { %p1497_p7 = scmp.lt.s32.totalorder %s1488_s7, %s1488_s7 }
  0x15   : > { %p1479_p12 = pneg %p1753_p11 }
  0x16   : > { %p1498_p10 = por %p1497_p7, %p1496_p5 }
  0x17   : > { %p1491_p0 = pnand %p1489_p13, %p1479_p12 }
  0x19   : > { %p1492_p3 = pneg %p1491_p0 }
  0x1b   : > { %p1499_p9 = pnand %p1498_p10, %p1492_p3 }
  0x1d   : > { %1502 = shalt.err (!%p1499_p9)
}
  0x1e   : > { %s1645_s8 = smov 128   ;;  %s1646_s9 = smov 8  }
  0x1f   : > { %1375 = dma.hbm_to_vmem [thread:$0]  (!%p1753_p11), %s1952_s1, 512, %s179_s29, [#allocation7], %s1645_s8, %s1645_s8, %s1646_s9  }
  0x20   : > { %s1514_s12 = scalar_lea.vmem %s195_s6, 512  ;;  %p1522_p1 = scmp.lt.s32.totalorder %s195_s6, %s195_s6 }
  0x21   : > { %p1515_p6 = scmp.ne.s32.totalorder %s195_s6, %s1514_s12  ;;  %p1523_p4 = scmp.lt.s32.totalorder %s1514_s12, %s1514_s12 }
  0x23   : > { %p1517_p13 = pnand %p1515_p6, %p1479_p12  ;;  %p1524_p5 = por %p1523_p4, %p1522_p1 }
  0x25   : > { %p1518_p0 = pneg %p1517_p13 }
  0x27   : > { %p1525_p10 = pnand %p1524_p5, %p1518_p0 }
  0x29   : > { %1528 = shalt.err (!%p1525_p10)
}
  0x2a   : > { %1378 = dma.hbm_to_vmem [thread:$0]  (!%p1753_p11), %s1953_s2, 512, %s195_s6, [#allocation7], %s1645_s8, %s1645_s8, %s1646_s9  }
  0x2b   : > { %s33_s21 = sadd.s32 1, %s1637_s19  ;;  %s40_s22 = sadd.s32 1, %s1629_s17 }
  0x2c   : > { %p35_p1 = scmp.ge.s32.totalorder %s33_s21, 2  ;;  %p47_p4 = scmp.ne.s32.totalorder %s1629_s17, %s1625_s16 }
  0x2d   : > { %p48_p6 = scmp.eq.s32.totalorder %s1641_s20, 0  ;;  %p1389_p12 = scmp.lt.s32.totalorder %s1641_s20, 2 }
  0x2e   : > { %s1977_s21 = smov (%p35_p1, %s33_s21), 0  ;;  %p1785_p7 = por %p1728_p2, %p47_p4 }
  0x2f   : > { %p49_p3 = por %p48_p6, %p47_p4  ;;  %s37_s29 = ssub.s32 %s1637_s19, %s1977_s21 }
  0x30   : > { %s211_s30 = sand.u32 1, %s1629_s17   ;;  %p38_p9 = scmp.eq.s32.totalorder %s37_s29, 0 }
  0x31   : > { %s1246_s5 = sshll.u32 %s211_s30, 3  ;;  %s1247_s6 = sshll.u32 %s1637_s19, 7 }
  0x32   : > { %s1794_s7 = scalar_select %p38_p9, %s1629_s17, %s40_s22  }
  0x33   : > { %s220_s10 = scalar_lea.hbm %s1951_s0, %s1247_s6  ;;  %s215_s11 = scalar_lea.vmem [#allocation3], %s1246_s5 }
  0x34   : > { %s222_s12 = sshll.u32 %s215_s11, 4  ;;  %p1801_p11 = pnand %p1389_p12, %p49_p3  ;;  %s223_s12 = int_to_ptr.vmem [resolvable:$true] %s222_s12 }
  0x35   : > { %s212_s13 = scalar_lea.sflag [#allocation4], %s211_s30  ;;  %s1542_s14 = scalar_lea.vmem %s223_s12, 128 }
  0x36   : > { %p1531_p2 = pneg %p1801_p11  ;;  %p1543_p13 = scmp.ne.s32.totalorder %s223_s12, %s1542_s14 }
  0x37   : > { %s1647_s22 = smov [#allocation3]  }
  0x38   : > { %p1545_p0 = pnand %p1543_p13, %p1531_p2  ;;  %s1547_s29 = sshll.u32 %s1647_s22, 4  ;;  %s1548_s29 = int_to_ptr.vmem [resolvable:$false] %s1547_s29 }
  0x39   : > { %s1549_s6 = scalar_lea.vmem %s1548_s29, 256  ;;  %p1550_p10 = scmp.lt.s32.totalorder %s223_s12, %s1548_s29 }
  0x3a   : > { %p1546_p5 = pneg %p1545_p0  ;;  %p1551_p1 = scmp.lt.s32.totalorder %s1549_s6, %s1542_s14 }
  0x3c   : > { %p1552_p4 = por %p1551_p1, %p1550_p10 }
  0x3e   : > { %p1553_p6 = pnand %p1552_p4, %p1546_p5 }
  0x40   : > { %1556 = shalt.err (!%p1553_p6)
}
  0x41   : > { %1382 = dma.hbm_to_vmem [thread:$0]  (!%p1801_p11), %s220_s10, 128, %s223_s12, %s212_s13  }
  0x42   : > { %231 = sbr.rel (%p1744_p8) target bundleno = 1637 (0x665), region = 36  ;;  %s1812_s30 = sand.u32 (!%p1744_p8), 1, %s1625_s16  }
  0x43   : > { %s1249_s5 = sshll.u32 (!%p1744_p8), %s1812_s30, 3  ;;  %s234_s8 = scalar_lea.sflag (!%p1744_p8), [#allocation4], %s1812_s30 }
  0x44   : > { %s237_s9 = scalar_lea.vmem (!%p1744_p8), [#allocation3], %s1249_s5  ;;  %p1967_p12 = scmp.ne.s32.totalorder (!%p1744_p8), %s1961_s25, 0 }
  0x47   : > { %1608 = dma.done.wait (%p1967_p12), %s234_s8, 128  }
  0x48   : > { %1610 = vsyncadd (%p1967_p12), %s234_s8, 4294967168  ;;  %p1968_p3 = scmp.ne.s32.totalorder %s1959_s23, 0 }
  0x4a   : > { %1612 = dma.done.wait (%p1968_p3), [#allocation7], 1024  }
  0x4b   : > { %1614 = vsyncadd (%p1968_p3), [#allocation7], 4294966272  ;;  %vm274_vm0 = vcmask 261120   ;;  %v1648_v0 = vmov 0.0   ;;  %vm1649_vm1 = vmmov 0   ;;  %v280_v1 = vld [vmem:[#allocation6 + $0x18] sm:$0xff] }
  0x4c   : > { %1298 = vmatprep.subr.mxu0 %v1648_v0  ;;  %1306 = vmatprep.mubr.msk.f32.mxu0 %vm1649_vm1, %v1648_v0  ;;  %275 = vst.msk [vmem:[#allocation2] sm:$0xff] %vm274_vm0, %v1648_v0  ;;  %v279_v2 = vld [vmem:[#allocation6 + $0x10] sm:$0xff]  ;;  %v278_v3 = vld [vmem:[#allocation6 + $0x8] sm:$0xff]  ;;  %v277_v4 = vld [vmem:[#allocation6] sm:$0xff]  ;;  %s1650_s23 = smov 64   ;;  %s1651_s25 = smov 96  }
  0x4d   : > { %1309 = vmatprep.subr.mxu1 %v1648_v0  ;;  %1311 = vmatprep.mubr.msk.f32.mxu1 %vm1649_vm1, %v1648_v0  ;;  %v276_v5 = vld [vmem:[%s237_s9] sm:$0xff]  ;;  %s1652_s27 = smov 88   ;;  %s1653_s10 = smov 120   ;;  %vm358_vm2 = vcmask 64512   ;;  %v1034_v58 = vld [vmem:[#allocation8 + $0x8] sm:$0xff]  ;;  %v1033_v59 = vld [vmem:[#allocation8] sm:$0xff] }
  0x4e   : > { %1299 = vmatpush3.msra.mxu0 %v280_v1  ;;  %s1654_s11 = smov 80   ;;  %s1655_s12 = smov 112   ;;  %v1036_v55 = vld [vmem:[#allocation8 + $0x18] sm:$0xff]  ;;  %v1035_v57 = vld [vmem:[#allocation8 + $0x10] sm:$0xff]  ;;  %vm1028_vm3 = vcmask 130048   ;;  %vm1030_vm4 = vcmask 195584  }
  0x4f   : > { %1300 = vmatprep.subr.mxu0 %v1648_v0  ;;  %s1656_s24 = smov 72   ;;  %s1657_s13 = smov 104  }
  0x50   : > { %1301 = vmatpush3.msra.mxu0 %v279_v2  ;;  %s1658_s14 = smov 56   ;;  %s1659_s22 = smov 40  }
  0x51   : > { %1302 = vmatprep.subr.mxu0 %v1648_v0  ;;  %s1660_s29 = smov 48   ;;  %s1661_s6 = smov 8  }
  0x52   : > { %1303 = vmatpush3.msra.mxu0 %v278_v3  ;;  %s1662_s8 = smov 16   ;;  %s1663_s9 = smov 24  }
  0x53   : > { %1304 = vmatprep.subr.mxu0 %v1648_v0 }
  0x54   : > { %1305 = vmatpush3.msra.mxu0 %v277_v4 }
  0x55   : > { %1307 = vmatmul.mubr.msk.f32.vlgmr.msra.gmra.mxu0 %vm274_vm0, %v276_v5  ;;  %1329 = vmatprep.subr.mxu0 %v1648_v0 }
  0x56   : > { %1331 = vmatprep.mubr.msk.f32.mxu0 %vm1649_vm1, %v1648_v0 }
 0x115   : > { %v1841_v6 = vpop.f32.mrf.mxu0 }
 0x116   : > { %442 = vrot.lane.b32.xlu1 %v1841_v6, %s1650_s23  ;;  %356 = vrot.lane.b32.xlu0 %v1841_v6, %s1651_s25 }
 0x117   : > { %v1308_v7 = vpop.f32.mrf.mxu0 }
 0x11a   : > { %522 = vrot.lane.b32.xlu1 %v1841_v6, %s1652_s27  ;;  %s1269_s27 = sshll.u32 %s1633_s18, 7 }
 0x11e   : > { %520 = vrot.lane.b32.xlu1 %v1841_v6, %s1653_s10  ;;  %s269_s10 = scalar_lea.vmem [#allocation9], %s1249_s5 }
 0x122   : > { %687 = vrot.lane.b32.xlu1 %v1841_v6, %s1654_s11  ;;  %s1139_s11 = sshll.u32 %s269_s10, 4  ;;  %s1140_s11 = int_to_ptr.vmem [resolvable:$true] %s1139_s11 }
 0x126   : > { %685 = vrot.lane.b32.xlu1 %v1841_v6, %s1655_s12 }
 0x12a   : > { %852 = vrot.lane.b32.xlu1 %v1841_v6, %s1656_s24 }
 0x12e   : > { %850 = vrot.lane.b32.xlu1 %v1841_v6, %s1657_s13  ;;  %s1137_s13 = scalar_lea.hbm %s1955_s4, %s1269_s27 }
 0x188   : > { %v443_v8 = vpop.permute.xlu1 %442  ;;  %v357_v9 = vpop.permute.xlu0 %356 }
 0x189   : > { %1310 = vmatpush3.xpose.msk.msra.mxu1 %vm358_vm2, %v357_v9 }
 0x18a   : > { %1314 = vmatprep.subr.mxu1 %v1648_v0 }
 0x18c   : > { %v523_v10 = vpop.permute.xlu1 %522  ;;  %1312 = vmatmul.mubr.msk.f32.vlgmr.msra.gmra.mxu1 %vm358_vm2, %v1841_v6 }
 0x18d   : > { %1315 = vmatpush3.msra.mxu1 %v443_v8  ;;  %1316 = vmatprep.mubr.msk.f32.mxu1 %vm1649_vm1, %v1648_v0 }
 0x18e   : > { %1319 = vmatprep.subr.mxu1 %v1648_v0 }
 0x190   : > { %v521_v11 = vpop.permute.xlu1 %520 }
 0x194   : > { %v688_v12 = vpop.permute.xlu1 %687 }
 0x195   : > { %1330 = vmatpush3.xpose.msk.msra.mxu0 %vm358_vm2, %v688_v12 }
 0x196   : > { %1339 = vmatprep.subr.mxu0 %v1648_v0 }
 0x198   : > { %v686_v13 = vpop.permute.xlu1 %685 }
 0x199   : > { %1332 = vmatmul.mubr.msk.f32.vlgmr.msra.gmra.mxu0 %vm358_vm2, %v686_v13 }
 0x19a   : > { %1341 = vmatprep.mubr.msk.f32.mxu0 %vm1649_vm1, %v1648_v0 }
 0x19c   : > { %v853_v14 = vpop.permute.xlu1 %852 }
 0x19d   : > { %1340 = vmatpush3.xpose.msk.msra.mxu0 %vm358_vm2, %v853_v14 }
 0x19e   : > { %1349 = vmatprep.subr.mxu0 %v1648_v0 }
 0x1a0   : > { %v851_v15 = vpop.permute.xlu1 %850 }
 0x1a1   : > { %1342 = vmatmul.mubr.msk.f32.vlgmr.msra.gmra.mxu0 %vm358_vm2, %v851_v15 }
 0x1a2   : > { %1357 = vmatprep.mubr.msk.f32.mxu0 %vm1649_vm1, %v1648_v0  ;;  %1350 = vmatpush3.msra.mxu0 %v1036_v55 }
 0x1a3   : > { %1351 = vmatprep.subr.mxu0 %v1648_v0 }
 0x1a4   : > { %1352 = vmatpush3.msra.mxu0 %v1035_v57 }
 0x1a5   : > { %1353 = vmatprep.subr.mxu0 %v1648_v0 }
 0x1a6   : > { %1354 = vmatpush3.msra.mxu0 %v1034_v58 }
 0x1a7   : > { %1355 = vmatprep.subr.mxu0 %v1648_v0 }
 0x1a8   : > { %1356 = vmatpush3.msra.mxu0 %v1033_v59 }
 0x24c   : > { %v429_v16 = vpop.f32.mrf.mxu1 }
 0x24d   : > { %v433_v17 = vsel %vm358_vm2, %v429_v16, -inf }
 0x24e   : > { %434 = vmax.xlane.f32.xlu0 %v433_v17  ;;  %v1313_v18 = vpop.f32.mrf.mxu1  ;;  %v1032_v17 = vld [vmem:[#allocation2] sm:$0xff] }
 0x259   : > { %v759_v19 = vpop.f32.mrf.mxu0 }
 0x25a   : > { %v763_v23 = vsel %vm358_vm2, %v759_v19, -inf }
 0x25b   : > { %v1333_v20 = vpop.f32.mrf.mxu0 }
 0x261   : > { %v924_v21 = vpop.f32.mrf.mxu0 }
 0x262   : > { %v928_v24 = vsel %vm358_vm2, %v924_v21, -inf }
 0x263   : > { %v1343_v22 = vpop.f32.mrf.mxu0 }
 0x264   : > { %607 = vrot.lane.b32.xlu0 %v1841_v6, %s1658_s14  ;;  %s1126_s14 = scalar_lea.sflag [#allocation5], %s1812_s30 }
 0x283   : > { %764 = vmax.xlane.f32.xlu0 %v763_v23 }
 0x287   : > { %929 = vmax.xlane.f32.xlu0 %v928_v24 }
 0x29d   : > { %937 = vrot.lane.b32.xlu0 %v1841_v6, %s1659_s22  ;;  %s1557_s22 = scalar_lea.vmem %s1140_s11, 128 }
 0x29e   : > { %p1558_p8 = scmp.ne.s32.totalorder %s1140_s11, %s1557_s22 }
 0x2a0   : > { %p1559_p9 = pnand %p1558_p8, %p1785_p7 }
 0x2a2   : > { %p1560_p11 = pneg %p1559_p9 }
 0x2d7   : > { %v435_v25 = vpop.xlane.xlu0 %434 }
 0x2d8   : > { %v436_v26 = vsub.f32 %v429_v16, %v435_v25 }
 0x2da   : > { %v437_v27 = vmul.f32 1.442695, %v436_v26 }
 0x2db   : > { %v608_v29 = vpop.permute.xlu0 %607 }
 0x2dc   : > { %1461 = vpow2.f32 %v437_v27 }
 0x2e9   : > { %v1462_v28 = vpop.eup %1461 }
 0x2ea   : > { %1317 = vmatmul.mubr.msk.f32.vlgmr.msra.gmra.mxu1 %vm358_vm2, %v1462_v28  ;;  %v439_v52 = vsel %vm358_vm2, %v1462_v28, 0.0 }
 0x2eb   : > { %1320 = vmatpush3.xpose.msk.msra.mxu1 %vm358_vm2, %v523_v10  ;;  %1321 = vmatprep.mubr.msk.f32.mxu1 %vm1649_vm1, %v1648_v0 }
 0x2ec   : > { %1324 = vmatprep.subr.mxu1 %v1648_v0 }
 0x2ee   : > { %1322 = vmatmul.mubr.msk.f32.vlgmr.msra.gmra.mxu1 %vm358_vm2, %v521_v11 }
 0x2ef   : > { %1325 = vmatpush3.msra.mxu1 %v608_v29  ;;  %1326 = vmatprep.mubr.msk.f32.mxu1 %vm1649_vm1, %v1648_v0 }
 0x2f0   : > { %1334 = vmatprep.subr.mxu1 %v1648_v0 }
 0x30c   : > { %v765_v35 = vpop.xlane.xlu0 %764 }
 0x30d   : > { %v766_v36 = vsub.f32 %v759_v19, %v765_v35 }
 0x30f   : > { %v767_v37 = vmul.f32 1.442695, %v766_v36 }
 0x310   : > { %v930_v40 = vpop.xlane.xlu0 %929 }
 0x311   : > { %1463 = vpow2.f32 %v767_v37  ;;  %v931_v41 = vsub.f32 %v924_v21, %v930_v40  ;;  %v1267_v21 = vld [vmem:[%s1954_s3] ss:$0 sm:$0xff] }
 0x313   : > { %v932_v44 = vmul.f32 1.442695, %v931_v41 }
 0x314   : > { %v938_v50 = vpop.permute.xlu0 %937 }
 0x31e   : > { %v1464_v38 = vpop.eup %1463 }
 0x31f   : > { %v769_v39 = vsel %vm358_vm2, %v1464_v38, 0.0 }
 0x3aa   : > { %v1882_v30 = vpop.f32.mrf.mxu1 }
 0x3ac   : > { %v1318_v31 = vpop.f32.mrf.mxu1 }
 0x3ae   : > { %v594_v32 = vpop.f32.mrf.mxu1 }
 0x3af   : > { %v598_v33 = vsel %vm358_vm2, %v594_v32, -inf }
 0x3b0   : > { %599 = vmax.xlane.f32.xlu1 %v598_v33  ;;  %v1323_v34 = vpop.f32.mrf.mxu1 }
 0x3c1   : > { %772 = vrot.lane.b32.xlu1 %v1841_v6, %s1660_s29  ;;  %s1664_s29 = smov [#allocation9]  }
 0x3c2   : > { %s1561_s18 = sshll.u32 %s1664_s29, 4  ;;  %s1562_s18 = int_to_ptr.vmem [resolvable:$false] %s1561_s18 }
 0x3c3   : > { %s1563_s5 = scalar_lea.vmem %s1562_s18, 256  ;;  %p1564_p2 = scmp.lt.s32.totalorder %s1140_s11, %s1562_s18 }
 0x3c4   : > { %p1565_p13 = scmp.lt.s32.totalorder %s1563_s5, %s1557_s22 }
 0x3c6   : > { %p1566_p0 = por %p1565_p13, %p1564_p2 }
 0x3c8   : > { %p1567_p5 = pnand %p1566_p0, %p1560_p11 }
 0x3e5   : > { %770 = vadd.xlane.f32.xlu1 %v769_v39 }
 0x439   : > { %v600_v42 = vpop.xlane.xlu1 %599 }
 0x43a   : > { %v601_v43 = vsub.f32 %v594_v32, %v600_v42 }
 0x43c   : > { %v602_v45 = vmul.f32 1.442695, %v601_v43 }
 0x43d   : > { %v773_v47 = vpop.permute.xlu1 %772 }
 0x43e   : > { %1465 = vpow2.f32 %v602_v45 }
 0x43f   : > { %1467 = vpow2.f32 %v932_v44 }
 0x44b   : > { %v1466_v46 = vpop.eup %1465 }
 0x44c   : > { %1327 = vmatmul.mubr.msk.f32.vlgmr.msra.gmra.mxu1 %vm358_vm2, %v1466_v46  ;;  %v604_v48 = vsel %vm358_vm2, %v1466_v46, 0.0  ;;  %v1468_v49 = vpop.eup %1467 }
 0x44d   : > { %1335 = vmatpush3.msra.mxu1 %v773_v47  ;;  %605 = vadd.xlane.f32.xlu0 %v604_v48  ;;  %v934_v51 = vsel %vm358_vm2, %v1468_v49, 0.0 }
 0x44e   : > { %1336 = vmatprep.mubr.msk.f32.mxu1 %vm1649_vm1, %v1648_v0  ;;  %1344 = vmatprep.subr.mxu1 %v1648_v0 }
 0x450   : > { %1337 = vmatmul.mubr.msk.f32.vlgmr.msra.gmra.mxu1 %vm358_vm2, %v1464_v38 }
 0x451   : > { %1345 = vmatpush3.msra.mxu1 %v938_v50  ;;  %935 = vadd.xlane.f32.xlu0 %v934_v51 }
 0x452   : > { %1346 = vmatprep.mubr.msk.f32.mxu1 %vm1649_vm1, %v1648_v0 }
 0x454   : > { %1347 = vmatmul.mubr.msk.f32.vlgmr.msra.gmra.mxu1 %vm358_vm2, %v1468_v49 }
 0x455   : > { %440 = vadd.xlane.f32.xlu0 %v439_v52 }
 0x46e   : > { %v771_v54 = vpop.xlane.xlu1 %770 }
 0x4d6   : > { %v606_v53 = vpop.xlane.xlu0 %605 }
 0x4d7   : > { %1469 = vrcp.f32 %v606_v53 }
 0x4d8   : > { %1471 = vrcp.f32 %v771_v54 }
 0x4da   : > { %v936_v56 = vpop.xlane.xlu0 %935 }
 0x4db   : > { %1473 = vrcp.f32 %v936_v56 }
 0x4de   : > { %v441_v0 = vpop.xlane.xlu0 %440 }
 0x4df   : > { %1475 = vrcp.f32 %v441_v0 }
 0x4e4   : > { %v1470_v60 = vpop.eup %1469 }
 0x4e5   : > { %v1472_v1 = vpop.eup %1471 }
 0x4e8   : > { %v1474_v5 = vpop.eup %1473 }
 0x4ec   : > { %v1476_v9 = vpop.eup %1475 }
 0x4ed   : > { %v519_v11 = vmul.f32 %v1476_v9, %v1882_v30 }
 0x50c   : > { %v679_v61 = vpop.f32.mrf.mxu1 }
 0x50d   : > { %v684_v62 = vmul.f32 %v1470_v60, %v679_v61 }
 0x50e   : > { %v1328_v63 = vpop.f32.mrf.mxu1 }
 0x50f   : > { %1016 = vrot.lane.b32.xlu0 %v684_v62, %s1661_s6 }
 0x510   : > { %v844_v2 = vpop.f32.mrf.mxu1 }
 0x511   : > { %v849_v3 = vmul.f32 %v1472_v1, %v844_v2 }
 0x512   : > { %v1338_v4 = vpop.f32.mrf.mxu1 }
 0x513   : > { %1020 = vrot.lane.b32.xlu1 %v849_v3, %s1662_s8 }
 0x514   : > { %v1009_v6 = vpop.f32.mrf.mxu1 }
 0x515   : > { %v1014_v7 = vmul.f32 %v1474_v5, %v1009_v6 }
 0x516   : > { %v1348_v8 = vpop.f32.mrf.mxu1 }
 0x517   : > { %1024 = vrot.lane.b32.xlu0 %v1014_v7, %s1663_s9 }
 0x581   : > { %v1017_v10 = vpop.permute.xlu0 %1016 }
 0x582   : > { %v1027_v13 = vsel %vm358_vm2, %v519_v11, %v1017_v10 }
 0x585   : > { %v1021_v12 = vpop.permute.xlu1 %1020 }
 0x586   : > { %v1029_v14 = vsel %vm1028_vm3, %v1027_v13, %v1021_v12 }
 0x589   : > { %v1025_v15 = vpop.permute.xlu0 %1024 }
 0x58a   : > { %v1031_v16 = vsel %vm1030_vm4, %v1029_v14, %v1025_v15 }
 0x58b   : > { %1358 = vmatmul.mubr.msk.f32.vlgmr.msra.gmra.mxu0 %vm274_vm0, %v1031_v16 }
 0x64b   : > { %v1106_v18 = vpop.f32.mrf.mxu0 }
 0x64c   : > { %v1110_v19 = vadd.f32 %v1106_v18, %v1032_v17 }
 0x64d   : > { %v1359_v20 = vpop.f32.mrf.mxu0 }
 0x64e   : > { %1111 = vst.msk [vmem:[#allocation2] sm:$0xff] %vm274_vm0, %v1110_v19 }
 0x655   : > { %v1115_v22 = vld [vmem:[#allocation2] sm:$0xff] }
 0x656   : > { %v1123_v23 = vadd.f32 %v1267_v21, %v1115_v22 }
 0x658   : > { %1124 = vst.msk [vmem:[%s269_s10] sm:$0xff] %vm274_vm0, %v1123_v23 }
 0x659   : > { %1570 = shalt.err (!%p1567_p5)
}
 0x65a   : > { %s1571_s6 = scalar_lea.hbm %s1137_s13, 128  ;;  %s1575_s9 = scalar_lea.hbm %s1955_s4, 256 }
 0x65b   : > { %p1572_p10 = scmp.ne.s32.totalorder %s1137_s13, %s1571_s6  ;;  %p1576_p6 = scmp.lt.s32.totalorder %s1137_s13, %s1955_s4 }
 0x65c   : > { %p1577_p12 = scmp.lt.s32.totalorder %s1575_s9, %s1571_s6 }
 0x65d   : > { %p1573_p1 = pnand %p1572_p10, %p1785_p7 }
 0x65e   : > { %p1578_p3 = por %p1577_p12, %p1576_p6 }
 0x65f   : > { %p1574_p4 = pneg %p1573_p1 }
 0x661   : > { %p1579_p8 = pnand %p1578_p3, %p1574_p4 }
 0x663   : > { %1582 = shalt.err (!%p1579_p8)
}
 0x664   : > { %1370 = dma.vmem_to_hbm [thread:$0]  (%p1785_p7), %s1140_s11, 128, %s1137_s13, %s1126_s14  }
 0x665 PF: > { %s1151_s27 = sand.u32 1, %s1621_s15   ;;  %p1969_p9 = scmp.ne.s32.totalorder %s1962_s26, 0 }
 0x666   : > { %p1970_p11 = scmp.ge.s32.totalorder %s1641_s20, 2  ;;  %s1152_s10 = scalar_lea.sflag [#allocation5], %s1151_s27 }
 0x668   : > { %p1384_p2 = pnand %p1970_p11, %p1969_p9 }
 0x66a   : > { %p1385_p13 = pneg %p1384_p2 }
 0x66c   : > { %1616 = dma.done.wait (%p1385_p13), %s1152_s10, 128  }
 0x66d   : > { %1618 = vsyncadd (%p1385_p13), %s1152_s10, 4294967168  ;;  %s21_s20 = sadd.s32 1, %s1641_s20   ;;  %s1971_s15 = smov %s1625_s16 }
 0x66e   : > { %p18_p0 = scmp.ge.s32.totalorder %s21_s20, 4   ;;  %s1972_s16 = smov %s1629_s17 }
 0x66f   : > { %s1973_s17 = smov %s1794_s7  ;;  %s1974_s18 = smov %s1637_s19 }
 0x670   : > { %s1975_s19 = smov %s1977_s21  ;;  %20 = sbr.rel (!%p18_p0) target bundleno = 7 (0x7), region = 99 }
 0x675   :  { %1157 = vsyncpa [#allocation4], 1 }
 0x676   :  { %1159 = vsyncpa [#allocation4 + $0x1], 1 }
 0x677   :  { %1160 = vsyncpa [#allocation7], 1 }
 0x678   :  { %1161 = vsyncpa [#allocation5], 1 }
 0x679   :  { %1163 = vsyncpa [#allocation5 + $0x1], 1 }

</bundles_post_ra>
